<compile_context>
chip_gen: v5e
topology: v5e:2x2
jax: 0.10.0
libtpu: 0.0.40
codegen_flags: <defaults>
</compile_context>

<pallas_src>
import functools

import jax
import jax.numpy as jnp
from jax import lax
from jax.experimental import pallas as pl
from jax.experimental.pallas import tpu as pltpu


def _conv3x3_kernel(x_ref, w_ref, o_ref):
    # x_ref: (1, H+2, W+2, Cin)  whole zero-padded NHWC image (resident over H tiles)
    # w_ref: (Cout, 9*Cin)       columns ordered (kh*3 + kw)*Cin + cin
    # o_ref: (1, Cout, TH*W)     lane-dense tile covering output rows [ht*TH, ht*TH+TH)
    cin = x_ref.shape[3]
    w = x_ref.shape[2] - 2
    th = o_ref.shape[2] // w

    ht = pl.program_id(1)
    row0 = pl.multiple_of(ht * th, th)  # first padded input row used by this tile

    # Build the im2col operand (TH*W, 9*Cin) from 9 shifted ref views (views are
    # zero-cost; the concat puts all taps on the contraction axis).
    parts = []
    for kh in range(3):
        for kw in range(3):
            parts.append(x_ref[0, pl.ds(row0 + kh, th), kw:kw + w, :])
    patches = jnp.concatenate(parts, axis=-1).reshape(th * w, 9 * cin)

    # Single MXU matmul with K = 9*Cin, laid out (Cout, TH*W) -> lane-dense store.
    out = lax.dot_general(
        w_ref[...], patches,
        dimension_numbers=(((1,), (1,)), ((), ())),
        preferred_element_type=jnp.float32)
    o_ref[0] = out.astype(o_ref.dtype)


def _pick_tile_h(h, w):
    """Smallest H tile whose flattened width TH*W is lane-aligned and >=1024."""
    cands = [d for d in range(1, h + 1) if h % d == 0 and (d * w) % 128 == 0]
    if not cands:
        return h                    # fall back to whole-image tile (always legal)
    for d in cands:
        if d * w >= 1024:
            return d
    return cands[-1]


@functools.partial(jax.jit, static_argnames=("tile_h",))
def overlap_patch_embed(x_nchw, weight_oihw, tile_h=None):
    """x_nchw: (B, Cin, H, W); weight_oihw: (Cout, Cin, 3, 3) -> (B, Cout, H, W)."""
    b, cin, h, w = x_nchw.shape
    cout = weight_oihw.shape[0]
    th = _pick_tile_h(h, w) if tile_h is None else tile_h
    if h % th != 0 or (th != h and (th * w) % 128 != 0):
        raise ValueError(f"tile_h={th} incompatible with H={h}, W={w}")

    # NCHW -> NHWC (channels on lanes) + spatial zero-pad of 1 (stride=1, pad=1).
    x_pad = jnp.pad(jnp.transpose(x_nchw, (0, 2, 3, 1)),
                    ((0, 0), (1, 1), (1, 1), (0, 0)))
    # (Cout, Cin, 3, 3) -> (Cout, 3, 3, Cin) -> (Cout, 9*Cin): one 2-D MXU operand.
    w_flat = jnp.transpose(weight_oihw, (0, 2, 3, 1)).reshape(cout, 9 * cin)

    itemsize = jnp.dtype(x_nchw.dtype).itemsize
    in_block = (h + 2) * (w + 2) * cin * itemsize
    out_block = cout * th * w * itemsize
    w_bytes = cout * 9 * cin * jnp.dtype(weight_oihw.dtype).itemsize
    vmem_limit = min(
        max(2 * in_block + 2 * out_block + 2 * w_bytes + (8 << 20), 32 << 20),
        128 << 20)

    out_flat = pl.pallas_call(
        _conv3x3_kernel,
        out_shape=jax.ShapeDtypeStruct((b, cout, h * w), x_nchw.dtype),
        grid_spec=pltpu.PrefetchScalarGridSpec(
            num_scalar_prefetch=0,
            grid=(b, h // th),
            in_specs=[
                pl.BlockSpec((1, h + 2, w + 2, cin), lambda bi, hi: (bi, 0, 0, 0)),
                pl.BlockSpec((cout, 9 * cin), lambda bi, hi: (0, 0)),
            ],
            out_specs=pl.BlockSpec((1, cout, th * w), lambda bi, hi: (bi, 0, hi)),
        ),
        compiler_params=pltpu.CompilerParams(
            dimension_semantics=("parallel", "parallel"),
            vmem_limit_bytes=vmem_limit),
    )(x_pad, w_flat)

    # (B, Cout, H*W) is already NCHW-ordered; the reshape is free (no transpose).
    return out_flat.reshape(b, cout, h, w)


if __name__ == "__main__":
    key = jax.random.PRNGKey(0)
    kx, kwt = jax.random.split(key)

    B, Cin, H, W = 2, 4, 16, 16
    Cout = 32  # embed_dim

    x = jax.random.normal(kx, (B, Cin, H, W), dtype=jnp.float32)
    # Deterministic kaiming-uniform-like init for Conv2d weight (Cout, Cin, 3, 3).
    fan_in = Cin * 3 * 3
    bound = (1.0 / fan_in) ** 0.5
    weight = jax.random.uniform(
        kwt, (Cout, Cin, 3, 3), dtype=jnp.float32, minval=-bound, maxval=bound)

    # Reference: same semantics as nn.Conv2d(3x3, stride=1, padding=1, bias=False).
    ref = lax.conv_general_dilated(
        x, weight, window_strides=(1, 1), padding=((1, 1), (1, 1)),
        dimension_numbers=("NCHW", "OIHW", "NCHW"))

    # Multi-H-tile path (grid (2, 2)) and auto-tiled path (grid (2, 1)).
    out_tiled = jax.block_until_ready(overlap_patch_embed(x, weight, tile_h=8))
    out_auto = jax.block_until_ready(overlap_patch_embed(x, weight))

    assert out_tiled.shape == (B, Cout, H, W)
    assert jnp.allclose(out_tiled, ref, atol=1e-5, rtol=1e-5)
    assert jnp.allclose(out_auto, ref, atol=1e-5, rtol=1e-5)

    print("KERNEL_OK")
</pallas_src>

<mosaic_0001>
module attributes {stable_mosaic.version = 11 : i64} {
  func.func @_conv3x3_kernel(%arg0: i32, %arg1: i32, %arg2: memref<1x18x18x4xf32, #tpu.memory_space<vmem>>, %arg3: memref<32x36xf32, #tpu.memory_space<vmem>>, %arg4: memref<1x32x128xf32, #tpu.memory_space<vmem>>) attributes {dimension_semantics = [#tpu.dimension_semantics<parallel>, #tpu.dimension_semantics<parallel>], iteration_bounds = array<i64: 2, 2>, scalar_prefetch = 0 : i64, scratch_operands = 0 : i64, tpu.core_type = #tpu.core_type<tc>, window_params = [{transform_indices = @transform_0, window_bounds = array<i64: 1, 18, 18, 4>}, {pipeline_mode = #tpu.pipeline_mode<synchronous>, transform_indices = @transform_1, window_bounds = array<i64: 32, 36>}, {transform_indices = @transform_2, window_bounds = array<i64: 1, 32, 128>}]} {
    %c8_i32 = arith.constant 8 : i32
    %0 = arith.muli %arg1, %c8_i32 : i32
    %1 = tpu.assume_multiple %0, 8 : i32
    %c0_i32 = arith.constant 0 : i32
    %2 = arith.addi %1, %c0_i32 : i32
    %c0 = arith.constant 0 : index
    %3 = arith.index_cast %2 : i32 to index
    %c0_0 = arith.constant 0 : index
    %c0_1 = arith.constant 0 : index
    %4 = vector.load %arg2[%c0, %3, %c0_0, %c0_1] : memref<1x18x18x4xf32, #tpu.memory_space<vmem>>, vector<1x8x16x4xf32>
    %5 = vector.shape_cast %4 : vector<1x8x16x4xf32> to vector<8x16x4xf32>
    %c0_i32_2 = arith.constant 0 : i32
    %6 = arith.addi %1, %c0_i32_2 : i32
    %c0_3 = arith.constant 0 : index
    %7 = arith.index_cast %6 : i32 to index
    %c1 = arith.constant 1 : index
    %c0_4 = arith.constant 0 : index
    %8 = vector.load %arg2[%c0_3, %7, %c1, %c0_4] : memref<1x18x18x4xf32, #tpu.memory_space<vmem>>, vector<1x8x16x4xf32>
    %9 = vector.shape_cast %8 : vector<1x8x16x4xf32> to vector<8x16x4xf32>
    %c0_i32_5 = arith.constant 0 : i32
    %10 = arith.addi %1, %c0_i32_5 : i32
    %c0_6 = arith.constant 0 : index
    %11 = arith.index_cast %10 : i32 to index
    %c2 = arith.constant 2 : index
    %c0_7 = arith.constant 0 : index
    %12 = vector.load %arg2[%c0_6, %11, %c2, %c0_7] : memref<1x18x18x4xf32, #tpu.memory_space<vmem>>, vector<1x8x16x4xf32>
    %13 = vector.shape_cast %12 : vector<1x8x16x4xf32> to vector<8x16x4xf32>
    %c1_i32 = arith.constant 1 : i32
    %14 = arith.addi %1, %c1_i32 : i32
    %c0_8 = arith.constant 0 : index
    %15 = arith.index_cast %14 : i32 to index
    %c0_9 = arith.constant 0 : index
    %c0_10 = arith.constant 0 : index
    %16 = vector.load %arg2[%c0_8, %15, %c0_9, %c0_10] : memref<1x18x18x4xf32, #tpu.memory_space<vmem>>, vector<1x8x16x4xf32>
    %17 = vector.shape_cast %16 : vector<1x8x16x4xf32> to vector<8x16x4xf32>
    %c1_i32_11 = arith.constant 1 : i32
    %18 = arith.addi %1, %c1_i32_11 : i32
    %c0_12 = arith.constant 0 : index
    %19 = arith.index_cast %18 : i32 to index
    %c1_13 = arith.constant 1 : index
    %c0_14 = arith.constant 0 : index
    %20 = vector.load %arg2[%c0_12, %19, %c1_13, %c0_14] : memref<1x18x18x4xf32, #tpu.memory_space<vmem>>, vector<1x8x16x4xf32>
    %21 = vector.shape_cast %20 : vector<1x8x16x4xf32> to vector<8x16x4xf32>
    %c1_i32_15 = arith.constant 1 : i32
    %22 = arith.addi %1, %c1_i32_15 : i32
    %c0_16 = arith.constant 0 : index
    %23 = arith.index_cast %22 : i32 to index
    %c2_17 = arith.constant 2 : index
    %c0_18 = arith.constant 0 : index
    %24 = vector.load %arg2[%c0_16, %23, %c2_17, %c0_18] : memref<1x18x18x4xf32, #tpu.memory_space<vmem>>, vector<1x8x16x4xf32>
    %25 = vector.shape_cast %24 : vector<1x8x16x4xf32> to vector<8x16x4xf32>
    %c2_i32 = arith.constant 2 : i32
    %26 = arith.addi %1, %c2_i32 : i32
    %c0_19 = arith.constant 0 : index
    %27 = arith.index_cast %26 : i32 to index
    %c0_20 = arith.constant 0 : index
    %c0_21 = arith.constant 0 : index
    %28 = vector.load %arg2[%c0_19, %27, %c0_20, %c0_21] : memref<1x18x18x4xf32, #tpu.memory_space<vmem>>, vector<1x8x16x4xf32>
    %29 = vector.shape_cast %28 : vector<1x8x16x4xf32> to vector<8x16x4xf32>
    %c2_i32_22 = arith.constant 2 : i32
    %30 = arith.addi %1, %c2_i32_22 : i32
    %c0_23 = arith.constant 0 : index
    %31 = arith.index_cast %30 : i32 to index
    %c1_24 = arith.constant 1 : index
    %c0_25 = arith.constant 0 : index
    %32 = vector.load %arg2[%c0_23, %31, %c1_24, %c0_25] : memref<1x18x18x4xf32, #tpu.memory_space<vmem>>, vector<1x8x16x4xf32>
    %33 = vector.shape_cast %32 : vector<1x8x16x4xf32> to vector<8x16x4xf32>
    %c2_i32_26 = arith.constant 2 : i32
    %34 = arith.addi %1, %c2_i32_26 : i32
    %c0_27 = arith.constant 0 : index
    %35 = arith.index_cast %34 : i32 to index
    %c2_28 = arith.constant 2 : index
    %c0_29 = arith.constant 0 : index
    %36 = vector.load %arg2[%c0_27, %35, %c2_28, %c0_29] : memref<1x18x18x4xf32, #tpu.memory_space<vmem>>, vector<1x8x16x4xf32>
    %37 = vector.shape_cast %36 : vector<1x8x16x4xf32> to vector<8x16x4xf32>
    %38 = tpu.concatenate %5, %9, %13, %17, %21, %25, %29, %33, %37 in 2 : vector<8x16x4xf32>, vector<8x16x4xf32>, vector<8x16x4xf32>, vector<8x16x4xf32>, vector<8x16x4xf32>, vector<8x16x4xf32>, vector<8x16x4xf32>, vector<8x16x4xf32>, vector<8x16x4xf32> -> vector<8x16x36xf32>
    %39 = vector.shape_cast %38 : vector<8x16x36xf32> to vector<128x36xf32>
    %c0_30 = arith.constant 0 : index
    %c0_31 = arith.constant 0 : index
    %40 = vector.load %arg3[%c0_30, %c0_31] : memref<32x36xf32, #tpu.memory_space<vmem>>, vector<32x36xf32>
    %cst = arith.constant dense<0.000000e+00> : vector<32x128xf32>
    %41 = tpu.matmul %40, %39, %cst {dimension_numbers = #tpu.dot_dimension_numbers<[1], [1], [0], [0], [0, 0, 1, 0], [], []>} : vector<32x36xf32>, vector<128x36xf32>, vector<32x128xf32> -> vector<32x128xf32>
    %c0_32 = arith.constant 0 : index
    %c0_33 = arith.constant 0 : index
    %c0_34 = arith.constant 0 : index
    %42 = vector.load %arg4[%c0_32, %c0_33, %c0_34] : memref<1x32x128xf32, #tpu.memory_space<vmem>>, vector<1x32x128xf32>
    %43 = vector.shape_cast %42 : vector<1x32x128xf32> to vector<32x128xf32>
    %44 = vector.shape_cast %41 : vector<32x128xf32> to vector<1x32x128xf32>
    tpu.vector_store %arg4[%c0_32, %c0_33, %c0_34], %44 {strides = array<i32>} : memref<1x32x128xf32, #tpu.memory_space<vmem>>, vector<1x32x128xf32>,
    return
  }
  func.func @transform_0(%arg0: i32, %arg1: i32) -> (i32, i32, i32, i32) {
    %c0_i32 = arith.constant 0 : i32
    %c0_i32_0 = arith.constant 0 : i32
    %c0_i32_1 = arith.constant 0 : i32
    %c0_i32_2 = arith.constant 0 : i32
    return %arg0, %c0_i32, %c0_i32_0, %c0_i32_1 : i32, i32, i32, i32
  }
  func.func @transform_1(%arg0: i32, %arg1: i32) -> (i32, i32) {
    %c0_i32 = arith.constant 0 : i32
    %c0_i32_0 = arith.constant 0 : i32
    %c0_i32_1 = arith.constant 0 : i32
    return %c0_i32, %c0_i32_0 : i32, i32
  }
  func.func @transform_2(%arg0: i32, %arg1: i32) -> (i32, i32, i32) {
    %c0_i32 = arith.constant 0 : i32
    %c0_i32_0 = arith.constant 0 : i32
    return %arg0, %c0_i32, %arg1 : i32, i32, i32
  }
}

</mosaic_0001>

<bundles_post_ra>
// kernel: overlap_patch_embed.1
= control target key start
LH: loop header
LB: loop body
LE: loop exit
PB: predicated region body
PF: predicated region fallthrough
CT: control target
= control target key end

     0   :  { %s1507_s9 = smov 0   ;;  %s1509_s10 = smov 0   ;;  %s2288_s0 = inlined_call_operand.vmem [shape: f32[2,18,18,4], index: 0, kind: input, shape index: {}]   ;;  %s2289_s1 = inlined_call_operand.vmem [shape: f32[32,36], index: 1, kind: input, shape index: {}]   ;;  %s2290_s2 = inlined_call_operand.vmem [shape: f32[2,32,256], index: 2, kind: output, shape index: {}]  }
   0x1   :  { %s1511_s11 = smov 0   ;;  %s1513_s12 = smov 0  }
   0x2   :  { %s1515_s13 = smov 0   ;;  %s1517_s14 = smov 0  }
   0x3   :  { %s1519_s15 = smov 0  }
   0x4 LB: > { %s21_s16 = sadd.s32 1, %s1474_s13  ;;  %s24_s17 = sadd.s32 1, %s1478_s14  ;;  %s1482_s15 = sphi %s1519_s15, %s12_s15   ;;  %s1478_s14 = sphi %s1517_s14, %s2316_s14   ;;  %s1474_s13 = sphi %s1515_s13, %s2315_s13   ;;  %s1470_s12 = sphi %s1513_s12, %s2314_s12   ;;  %s1466_s11 = sphi %s1511_s11, %s2313_s11   ;;  %s1462_s10 = sphi %s1509_s10, %s2312_s10   ;;  %s1458_s9 = sphi %s1507_s9, %s2311_s9  }
   0x5   : > { %p22_p0 = scmp.ge.s32.totalorder %s21_s16, 2  ;;  %s1181_s18 = sadd.s32 4294967295, %s1482_s15  }
   0x6   : > { %p90_p1 = scmp.ne.s32.totalorder %s1462_s10, %s1458_s9  ;;  %p91_p2 = scmp.eq.s32.totalorder %s1181_s18, 3 }
   0x7   : > { %s2318_s16 = smov (%p22_p0, %s21_s16), 0  ;;  %s2320_s17 = smov (!%p22_p0, %s24_s17), %s1478_s14 }
   0x8   : > { %s76_s19 = ssub.s32 %s1474_s13, %s2318_s16  ;;  %p26_p3 = scmp.ge.s32.totalorder %s2320_s17, 2 }
   0x9   : > { %p1185_p4 = scmp.ge.s32.totalorder %s1482_s15, 1  ;;  %p1553_p5 = por %p91_p2, %p90_p1 }
   0xa   : > { %p126_p6 = scmp.lt.s32.totalorder %s1482_s15, 5  ;;  %s2322_s17 = smov (%p26_p3, %s2320_s17), 0 }
   0xb   : > { %s75_s21 = ssub.s32 %s1478_s14, %s2322_s17  ;;  %s80_s23 = sadd.s32 1, %s1462_s10 }
   0xc   : > { %p127_p7 = pnand %p1185_p4, %p126_p6  ;;  %s77_s22 = sor.u32 %s76_s19, %s75_s21 }
   0xd   : > { %p78_p8 = scmp.eq.s32.totalorder %s77_s22, 0 }
   0xe   : > { %130 = sbr.rel (%p127_p7) target bundleno = 628 (0x274), region = 28 }
   0xf   : > { %s1564_s24 = scalar_select %p78_p8, %s1462_s10, %s80_s23  }
  0x13   : > { %p147_p9 = scmp.lt.s32.totalorder %s1470_s12, 1  ;;  %s1189_s26 = smul.u32 192, %s1466_s11  ;;  %vm817_vm0 = vcmask 31744   ;;  %vm834_vm1 = vcmask 64512   ;;  %vm851_vm2 = vcmask 97280   ;;  %vm868_vm3 = vcmask 130048  }
  0x14   : > { %s1484_s4 = smov 4   ;;  %s1485_s5 = smov 8   ;;  %vm885_vm4 = vcmask 162816   ;;  %vm902_vm5 = vcmask 195584   ;;  %vm919_vm6 = vcmask 228352   ;;  %vm936_vm7 = vcmask 261120  }
  0x15   : > { %s148_s25 = scalar_select %p147_p9, %s1470_s12, 1  ;;  %vm957_vm8 = vcmask 293888  }
  0x16   : > { %s1486_s6 = smov 12   ;;  %s1487_s7 = smov 20  }
  0x17   : > { %s1363_s27 = smul.u32 432, %s148_s25  ;;  %s1488_s8 = smov 16  }
  0x18   : > { %s1489_s18 = smov 28   ;;  %s1490_s19 = smov 24  }
  0x19   : > { %s151_s30 = scalar_lea.vmem %s2288_s0, %s1363_s27  ;;  %s1491_s21 = smov 32  }
  0x1a   : > { %s1572_s3 = scalar_lea.vmem %s151_s30, %s1189_s26 }
  0x1b   : > { %v1575_v0 = vld [vmem:[%s1572_s3 + $0x31] sm:$0xff]  ;;  %v1578_v1 = vld [vmem:[%s1572_s3 + $0x19] sm:$0xff]  ;;  %v171_v2 = vld [vmem:[%s1572_s3 + $0x1] sm:$0xff] }
  0x1c   : > { %329 = vrot.lane.b32.xlu2 %v1575_v0, %s1484_s4  ;;  %325 = vrot.lane.b32.xlu1 %v1578_v1, %s1484_s4  ;;  %v1587_v3 = vld [vmem:[%s1572_s3 + $0x39] sm:$0xff]  ;;  %v1590_v4 = vld [vmem:[%s1572_s3 + $0x21] sm:$0xff] }
  0x1d   : > { %321 = vrot.lane.b32.xlu0 %v171_v2, %s1484_s4  ;;  %2299 = vst [vmem:[#allocation3_spill] sm:$0xff] %v1590_v4  ;;  %v172_v5 = vld [vmem:[%s1572_s3 + $0x9] sm:$0xff]  ;;  %v1599_v6 = vld [vmem:[%s1572_s3 + $0x61] sm:$0xff]  ;;  %v1602_v7 = vld [vmem:[%s1572_s3 + $0x51] sm:$0xff] }
  0x1e   : > { %v1605_v8 = vld [vmem:[%s1572_s3 + $0x49] sm:$0xff]  ;;  %v1614_v9 = vld [vmem:[%s1572_s3 + $0x81] sm:$0xff]  ;;  %v1617_v10 = vld [vmem:[%s1572_s3 + $0x79] sm:$0xff] }
  0x1f   : > { %v1620_v11 = vld [vmem:[%s1572_s3 + $0x69] sm:$0xff]  ;;  %v1632_v13 = vld [vmem:[%s1572_s3 + $0x99] sm:$0xff]  ;;  %v1635_v14 = vld [vmem:[%s1572_s3 + $0x91] sm:$0xff] }
  0x20   : > { %v1629_v12 = vld [vmem:[%s1572_s3 + $0xa9] sm:$0xff]  ;;  %v1646_v17 = vld [vmem:[%s1572_s3 + $0xb1] sm:$0xff]  ;;  %v1659_v20 = vld [vmem:[%s1572_s3 + $0x1a] sm:$0xff] }
  0x21   : > { %v188_v15 = vld [vmem:[%s1572_s3 + $0xa] sm:$0xff]  ;;  %v187_v16 = vld [vmem:[%s1572_s3 + $0x2] sm:$0xff]  ;;  %v1653_v18 = vld [vmem:[%s1572_s3 + $0x32] sm:$0xff]  ;;  %2302 = vst [vmem:[#allocation6_spill] sm:$0xff] %v1659_v20 }
  0x22   : > { %2300 = vst [vmem:[#allocation4_spill] sm:$0xff] %v1653_v18  ;;  %v1656_v19 = vld [vmem:[%s1572_s3 + $0x22] sm:$0xff]  ;;  %v1668_v21 = vld [vmem:[%s1572_s3 + $0x52] sm:$0xff]  ;;  %v1671_v22 = vld [vmem:[%s1572_s3 + $0x4a] sm:$0xff] }
  0x23   : > { %2301 = vst [vmem:[#allocation5_spill] sm:$0xff] %v1656_v19  ;;  %v1674_v23 = vld [vmem:[%s1572_s3 + $0x3a] sm:$0xff]  ;;  %v1686_v25 = vld [vmem:[%s1572_s3 + $0x6a] sm:$0xff]  ;;  %v1689_v26 = vld [vmem:[%s1572_s3 + $0x62] sm:$0xff] }
  0x24   : > { %331 = vrot.lane.b32.xlu2 %v1587_v3, %s1484_s4  ;;  %327 = vrot.lane.b32.xlu1 %v1590_v4, %s1484_s4  ;;  %v1683_v24 = vld [vmem:[%s1572_s3 + $0x7a] sm:$0xff]  ;;  %v1701_v28 = vld [vmem:[%s1572_s3 + $0x92] sm:$0xff] }
  0x25   : > { %323 = vrot.lane.b32.xlu0 %v172_v5, %s1484_s4  ;;  %v1698_v27 = vld [vmem:[%s1572_s3 + $0x9a] sm:$0xff]  ;;  %v1704_v29 = vld [vmem:[%s1572_s3 + $0x82] sm:$0xff]  ;;  %v1714_v31 = vld [vmem:[%s1572_s3 + $0xb2] sm:$0xff] }
  0x26   : > { %v1192_v30 = vld [vmem:[%s1572_s3 + $0x18] sm:$0xff]  ;;  %v1717_v32 = vld [vmem:[%s1572_s3 + $0xaa] sm:$0xff]  ;;  %v1193_v35 = vld [vmem:[%s1572_s3 + $0x20] sm:$0xff] }
  0x27   : > { %v1725_v33 = vld [vmem:[%s1572_s3 + $0x38] sm:$0xff]  ;;  %v1728_v34 = vld [vmem:[%s1572_s3 + $0x30] sm:$0xff]  ;;  %v1737_v37 = vld [vmem:[%s1572_s3 + $0x60] sm:$0xff] }
  0x28   : > { %2303 = vst [vmem:[#allocation7_spill] sm:$0xff] %v1728_v34  ;;  %v1740_v38 = vld [vmem:[%s1572_s3 + $0x50] sm:$0xff]  ;;  %v1743_v39 = vld [vmem:[%s1572_s3 + $0x48] sm:$0xff]  ;;  %v1754_v41 = vld [vmem:[%s1572_s3 + $0x80] sm:$0xff] }
  0x29   : > { %2304 = vst [vmem:[#allocation8_spill] sm:$0xff] %v1740_v38  ;;  %v1757_v42 = vld [vmem:[%s1572_s3 + $0x78] sm:$0xff]  ;;  %v1760_v43 = vld [vmem:[%s1572_s3 + $0x68] sm:$0xff]  ;;  %v1777_v47 = vld [vmem:[%s1572_s3 + $0x90] sm:$0xff] }
  0x2a   : > { %v1771_v45 = vld [vmem:[%s1572_s3 + $0xa8] sm:$0xff]  ;;  %v1774_v46 = vld [vmem:[%s1572_s3 + $0x98] sm:$0xff]  ;;  %v1794_v53 = vld [vmem:[%s1572_s3 + $0xc0] sm:$0xff] }
  0x2b   : > { %v1791_v52 = vld [vmem:[%s1572_s3 + $0xc8] sm:$0xff]  ;;  %v1797_v54 = vld [vmem:[%s1572_s3 + $0xb0] sm:$0xff]  ;;  %v155_v4 = vld [vmem:[%s1572_s3] sm:$0xff] }
  0x2c   : > { %337 = vrot.lane.b32.xlu2 %v1599_v6, %s1484_s4  ;;  %335 = vrot.lane.b32.xlu1 %v1602_v7, %s1484_s4  ;;  %v1811_v59 = vld [vmem:[%s1572_s3 + $0xca] sm:$0xff] }
  0x2d   : > { %333 = vrot.lane.b32.xlu0 %v1605_v8, %s1484_s4  ;;  %v1223_v60 = vld [vmem:[%s1572_s3 + $0xc9] sm:$0xff] }
  0x2e   : > { %v156_v61 = vld [vmem:[%s1572_s3 + $0x8] sm:$0xff] }
  0x34   : > { %343 = vrot.lane.b32.xlu2 %v1614_v9, %s1484_s4  ;;  %341 = vrot.lane.b32.xlu1 %v1617_v10, %s1484_s4 }
  0x35   : > { %339 = vrot.lane.b32.xlu0 %v1620_v11, %s1484_s4 }
  0x3c   : > { %349 = vrot.lane.b32.xlu2 %v1629_v12, %s1484_s4  ;;  %347 = vrot.lane.b32.xlu1 %v1632_v13, %s1484_s4 }
  0x3d   : > { %345 = vrot.lane.b32.xlu0 %v1635_v14, %s1484_s4 }
  0x44   : > { %387 = vrot.lane.b32.xlu2 %v188_v15, %s1485_s5  ;;  %385 = vrot.lane.b32.xlu1 %v187_v16, %s1485_s5  ;;  %v1222_v16 = vld [vmem:[%s1572_s3 + $0xc1] sm:$0xff] }
  0x45   : > { %351 = vrot.lane.b32.xlu0 %v1646_v17, %s1484_s4 }
  0x4c   : > { %393 = vrot.lane.b32.xlu2 %v1653_v18, %s1485_s5  ;;  %391 = vrot.lane.b32.xlu1 %v1656_v19, %s1485_s5  ;;  %v1272_v19 = vld [vmem:[%s1572_s3 + $0xd9] sm:$0xff] }
  0x4d   : > { %389 = vrot.lane.b32.xlu0 %v1659_v20, %s1485_s5  ;;  %v1289_v20 = vld [vmem:[%s1572_s3 + $0xe2] sm:$0xff] }
  0x54   : > { %399 = vrot.lane.b32.xlu2 %v1668_v21, %s1485_s5  ;;  %397 = vrot.lane.b32.xlu1 %v1671_v22, %s1485_s5 }
  0x55   : > { %395 = vrot.lane.b32.xlu0 %v1674_v23, %s1485_s5 }
  0x5c   : > { %405 = vrot.lane.b32.xlu2 %v1683_v24, %s1485_s5  ;;  %403 = vrot.lane.b32.xlu1 %v1686_v25, %s1485_s5 }
  0x5d   : > { %401 = vrot.lane.b32.xlu0 %v1689_v26, %s1485_s5 }
  0x64   : > { %411 = vrot.lane.b32.xlu2 %v1698_v27, %s1485_s5  ;;  %409 = vrot.lane.b32.xlu1 %v1701_v28, %s1485_s5 }
  0x65   : > { %407 = vrot.lane.b32.xlu0 %v1704_v29, %s1485_s5 }
  0x6c   : > { %449 = vrot.lane.b32.xlu2 %v1192_v30, %s1486_s6  ;;  %415 = vrot.lane.b32.xlu1 %v1714_v31, %s1485_s5 }
  0x6d   : > { %413 = vrot.lane.b32.xlu0 %v1717_v32, %s1485_s5 }
  0x74   : > { %455 = vrot.lane.b32.xlu2 %v1725_v33, %s1486_s6  ;;  %453 = vrot.lane.b32.xlu1 %v1728_v34, %s1486_s6 }
  0x75   : > { %451 = vrot.lane.b32.xlu0 %v1193_v35, %s1486_s6 }
  0x76   : > { %v330_v36 = vpop.permute.xlu2 %329 }
  0x7c   : > { %461 = vrot.lane.b32.xlu2 %v1737_v37, %s1486_s6  ;;  %459 = vrot.lane.b32.xlu1 %v1740_v38, %s1486_s6 }
  0x7d   : > { %457 = vrot.lane.b32.xlu0 %v1743_v39, %s1486_s6 }
  0x7e   : > { %v1751_v40 = vpop.permute.xlu2 %331 }
  0x84   : > { %467 = vrot.lane.b32.xlu2 %v1754_v41, %s1486_s6  ;;  %465 = vrot.lane.b32.xlu1 %v1757_v42, %s1486_s6 }
  0x85   : > { %463 = vrot.lane.b32.xlu0 %v1760_v43, %s1486_s6 }
  0x86   : > { %v1768_v44 = vpop.permute.xlu2 %337 }
  0x8c   : > { %473 = vrot.lane.b32.xlu2 %v1771_v45, %s1486_s6  ;;  %471 = vrot.lane.b32.xlu1 %v1774_v46, %s1486_s6 }
  0x8d   : > { %469 = vrot.lane.b32.xlu0 %v1777_v47, %s1486_s6 }
  0x8e   : > { %v1785_v48 = vpop.permute.xlu2 %343  ;;  %v326_v49 = vpop.permute.xlu1 %325 }
  0x8f   : > { %v1788_v50 = vsel %vm817_vm0, %v1192_v30, %v326_v49  ;;  %v322_v51 = vpop.permute.xlu0 %321  ;;  %v1273_v30 = vld [vmem:[%s1572_s3 + $0xe1] sm:$0xff] }
  0x94   : > { %479 = vrot.lane.b32.xlu2 %v1791_v52, %s1486_s6  ;;  %477 = vrot.lane.b32.xlu1 %v1794_v53, %s1486_s6 }
  0x95   : > { %475 = vrot.lane.b32.xlu0 %v1797_v54, %s1486_s6  ;;  %s1311_s6 = sshll.u32 (%p1553_p5), %s1470_s12, 3 }
  0x96   : > { %v1805_v55 = vpop.permute.xlu2 %349  ;;  %v328_v56 = vpop.permute.xlu1 %327 }
  0x97   : > { %v1808_v57 = vsel %vm817_vm0, %v1193_v35, %v328_v56  ;;  %v324_v58 = vpop.permute.xlu0 %323  ;;  %v1257_v35 = vld [vmem:[%s1572_s3 + $0xe0] sm:$0xff] }
  0x98   : > { %v819_v62 = vsel %vm817_vm0, %v156_v61, %v324_v58 }
  0x9c   : > { %607 = vrot.lane.b32.xlu2 %v1811_v59, %s1487_s7  ;;  %543 = vrot.lane.b32.xlu1 %v1223_v60, %s1488_s8 }
  0x9d   : > { %513 = vrot.lane.b32.xlu0 %v1578_v1, %s1488_s8  ;;  %v822_v1 = vsel %vm817_vm0, %v1728_v34, %v330_v36  ;;  %v1288_v34 = vld [vmem:[%s1572_s3 + $0xda] sm:$0xff] }
  0x9e   : > { %v388_v63 = vpop.permute.xlu2 %387  ;;  %v336_v2 = vpop.permute.xlu1 %335 }
  0x9f   : > { %v1822_v5 = vsel %vm834_vm1, %v819_v62, %v388_v63  ;;  %v334_v15 = vpop.permute.xlu0 %333  ;;  %v1256_v62 = vld [vmem:[%s1572_s3 + $0xd8] sm:$0xff]  ;;  %v1238_v63 = vld [vmem:[%s1572_s3 + $0xc2] sm:$0xff]  ;;  %v825_v36 = vsel %vm817_vm0, %v1740_v38, %v336_v2  ;;  %s144_s3 = sand.u32 1, %s1458_s9  }
  0xa0   : > { %s1186_s4 = sshll.u32 %s144_s3, 5 }
  0xa1   : > { %s146_s5 = scalar_lea.vmem [#allocation2], %s1186_s4 }
  0xa4   : > { %541 = vrot.lane.b32.xlu2 %v1222_v16, %s1488_s8  ;;  %735 = vrot.lane.b32.xlu1 %v1273_v30, %s1489_s18 }
  0xa5   : > { %671 = vrot.lane.b32.xlu0 %v1257_v35, %s1490_s19 }
  0xa6   : > { %v394_v49 = vpop.permute.xlu2 %393  ;;  %v342_v56 = vpop.permute.xlu1 %341 }
  0xa7   : > { %v1833_v58 = vsel %vm834_vm1, %v822_v1, %v394_v49  ;;  %v340_v61 = vpop.permute.xlu0 %339  ;;  %v828_v2 = vsel %vm817_vm0, %v1757_v42, %v342_v56 }
  0xac   : > { %669 = vrot.lane.b32.xlu2 %v1256_v62, %s1490_s19  ;;  %605 = vrot.lane.b32.xlu1 %v1238_v63, %s1487_s7 }
  0xad   : > { %799 = vrot.lane.b32.xlu0 %v1289_v20, %s1491_s21  ;;  %v818_v20 = vsel %vm817_vm0, %v155_v4, %v322_v51 }
  0xae   : > { %v400_v30 = vpop.permute.xlu2 %399  ;;  %v348_v35 = vpop.permute.xlu1 %347 }
  0xaf   : > { %v1844_v1 = vsel %vm834_vm1, %v825_v36, %v400_v30  ;;  %v346_v49 = vpop.permute.xlu0 %345  ;;  %v831_v4 = vsel %vm817_vm0, %v1774_v46, %v348_v35 }
  0xb4   : > { %797 = vrot.lane.b32.xlu2 %v1288_v34, %s1491_s21  ;;  %539 = vrot.lane.b32.xlu1 %v1646_v17, %s1488_s8 }
  0xb5   : > { %733 = vrot.lane.b32.xlu0 %v1272_v19, %s1489_s18 }
  0xb6   : > { %v406_v62 = vpop.permute.xlu2 %405  ;;  %v386_v18 = vpop.permute.xlu1 %385 }
  0xb7   : > { %v1857_v36 = vsel %vm834_vm1, %v828_v2, %v406_v62  ;;  %v835_v30 = vsel %vm834_vm1, %v818_v20, %v386_v18  ;;  %v352_v38 = vpop.permute.xlu0 %351 }
  0xb8   : > { %v1862_v34 = vsel %vm817_vm0, %v1797_v54, %v352_v38 }
  0xbc   : > { %731 = vrot.lane.b32.xlu2 %v1223_v60, %s1489_s18  ;;  %667 = vrot.lane.b32.xlu1 %v1791_v52, %s1490_s19  ;;  %v824_v52 = vsel %vm817_vm0, %v1743_v39, %v334_v15  ;;  %v827_v15 = vsel %vm817_vm0, %v1760_v43, %v340_v61 }
  0xbd   : > { %603 = vrot.lane.b32.xlu0 %v1714_v31, %s1487_s7 }
  0xbe   : > { %v412_v19 = vpop.permute.xlu2 %411  ;;  %v392_v51 = vpop.permute.xlu1 %391 }
  0xbf   : > { %v1872_v18 = vsel %vm834_vm1, %v831_v4, %v412_v19  ;;  %v838_v38 = vsel %vm834_vm1, %v1808_v57, %v392_v51  ;;  %v390_v56 = vpop.permute.xlu0 %389  ;;  %v823_v57 = vsel %vm817_vm0, %v1725_v33, %v1751_v40 }
  0xc0   : > { %v837_v60 = vsel %vm834_vm1, %v1788_v50, %v390_v56 }
  0xc4   : > { %601 = vrot.lane.b32.xlu2 %v1717_v32, %s1487_s7  ;;  %795 = vrot.lane.b32.xlu1 %v1811_v59, %s1491_s21 }
  0xc5   : > { %537 = vrot.lane.b32.xlu0 %v1629_v12, %s1488_s8 }
  0xc6   : > { %v450_v35 = vpop.permute.xlu2 %449  ;;  %v398_v20 = vpop.permute.xlu1 %397 }
  0xc7   : > { %v1890_v50 = vsel %vm851_vm2, %v835_v30, %v450_v35  ;;  %v841_v2 = vsel %vm834_vm1, %v824_v52, %v398_v20  ;;  %v396_v62 = vpop.permute.xlu0 %395  ;;  %v826_v30 = vsel %vm817_vm0, %v1737_v37, %v1768_v44 }
  0xc8   : > { %v840_v59 = vsel %vm834_vm1, %v823_v57, %v396_v62 }
  0xcc   : > { %535 = vrot.lane.b32.xlu2 %v1632_v13, %s1488_s8  ;;  %729 = vrot.lane.b32.xlu1 %v1222_v16, %s1489_s18 }
  0xcd   : > { %665 = vrot.lane.b32.xlu0 %v1794_v53, %s1490_s19  ;;  %v830_v53 = vsel %vm817_vm0, %v1777_v47, %v346_v49 }
  0xce   : > { %v456_v40 = vpop.permute.xlu2 %455  ;;  %v404_v4 = vpop.permute.xlu1 %403 }
  0xcf   : > { %v1905_v19 = vsel %vm851_vm2, %v838_v38, %v456_v40  ;;  %v844_v51 = vsel %vm834_vm1, %v827_v15, %v404_v4  ;;  %v402_v56 = vpop.permute.xlu0 %401  ;;  %v829_v38 = vsel %vm817_vm0, %v1754_v41, %v1785_v48  ;;  %v832_v48 = vsel %vm817_vm0, %v1771_v45, %v1805_v55 }
  0xd0   : > { %v843_v16 = vsel %vm834_vm1, %v826_v30, %v402_v56 }
  0xd4   : > { %663 = vrot.lane.b32.xlu2 %v1797_v54, %s1490_s19  ;;  %599 = vrot.lane.b32.xlu1 %v1698_v27, %s1487_s7 }
  0xd5   : > { %793 = vrot.lane.b32.xlu0 %v1238_v63, %s1491_s21 }
  0xd6   : > { %v462_v44 = vpop.permute.xlu2 %461  ;;  %v410_v61 = vpop.permute.xlu1 %409 }
  0xd7   : > { %v1920_v52 = vsel %vm851_vm2, %v841_v2, %v462_v44  ;;  %v847_v35 = vsel %vm834_vm1, %v830_v53, %v410_v61  ;;  %v408_v54 = vpop.permute.xlu0 %407 }
  0xd8   : > { %v846_v20 = vsel %vm834_vm1, %v829_v38, %v408_v54 }
  0xdc   : > { %791 = vrot.lane.b32.xlu2 %v1714_v31, %s1491_s21  ;;  %533 = vrot.lane.b32.xlu1 %v1635_v14, %s1488_s8 }
  0xdd   : > { %727 = vrot.lane.b32.xlu0 %v1646_v17, %s1489_s18 }
  0xde   : > { %v468_v63 = vpop.permute.xlu2 %467  ;;  %v416_v49 = vpop.permute.xlu1 %415 }
  0xdf   : > { %v1934_v57 = vsel %vm851_vm2, %v844_v51, %v468_v63  ;;  %v414_v2 = vpop.permute.xlu0 %413 }
  0xe0   : > { %v1937_v62 = vsel %vm834_vm1, %v832_v48, %v414_v2 }
  0xe4   : > { %725 = vrot.lane.b32.xlu2 %v1629_v12, %s1489_s18  ;;  %661 = vrot.lane.b32.xlu1 %v1771_v45, %s1490_s19 }
  0xe5   : > { %597 = vrot.lane.b32.xlu0 %v1701_v28, %s1487_s7 }
  0xe6   : > { %v474_v17 = vpop.permute.xlu2 %473  ;;  %v454_v31 = vpop.permute.xlu1 %453 }
  0xe7   : > { %v1946_v55 = vsel %vm851_vm2, %v847_v35, %v474_v17  ;;  %v1949_v15 = vsel %vm851_vm2, %v837_v60, %v454_v31  ;;  %v452_v40 = vpop.permute.xlu0 %451 }
  0xe8   : > { %v1953_v4 = vsel %vm851_vm2, %v1822_v5, %v452_v40 }
  0xec   : > { %595 = vrot.lane.b32.xlu2 %v1704_v29, %s1487_s7  ;;  %789 = vrot.lane.b32.xlu1 %v1717_v32, %s1491_s21 }
  0xed   : > { %531 = vrot.lane.b32.xlu0 %v1614_v9, %s1488_s8 }
  0xee   : > { %v480_v12 = vpop.permute.xlu2 %479  ;;  %v460_v45 = vpop.permute.xlu1 %459 }
  0xef   : > { %v1962_v30 = vsel %vm851_vm2, %v840_v59, %v460_v45  ;;  %v458_v60 = vpop.permute.xlu0 %457 }
  0xf0   : > { %v1966_v51 = vsel %vm851_vm2, %v1833_v58, %v458_v60 }
  0xf4   : > { %529 = vrot.lane.b32.xlu2 %v1617_v10, %s1488_s8  ;;  %723 = vrot.lane.b32.xlu1 %v1632_v13, %s1489_s18 }
  0xf5   : > { %659 = vrot.lane.b32.xlu0 %v1774_v46, %s1490_s19 }
  0xf6   : > { %v608_v32 = vpop.permute.xlu2 %607  ;;  %v466_v5 = vpop.permute.xlu1 %465 }
  0xf7   : > { %v1975_v56 = vsel %vm851_vm2, %v843_v16, %v466_v5  ;;  %v464_v59 = vpop.permute.xlu0 %463 }
  0xf8   : > { %v1979_v53 = vsel %vm851_vm2, %v1844_v1, %v464_v59 }
  0xfc   : > { %657 = vrot.lane.b32.xlu2 %v1777_v47, %s1490_s19  ;;  %593 = vrot.lane.b32.xlu1 %v1683_v24, %s1487_s7 }
  0xfd   : > { %787 = vrot.lane.b32.xlu0 %v1698_v27, %s1491_s21 }
  0xfe   : > { %v542_v13 = vpop.permute.xlu2 %541  ;;  %v472_v46 = vpop.permute.xlu1 %471 }
  0xff   : > { %v1988_v58 = vsel %vm851_vm2, %v846_v20, %v472_v46  ;;  %v470_v16 = vpop.permute.xlu0 %469 }
 0x100   : > { %v1992_v44 = vsel %vm851_vm2, %v1857_v36, %v470_v16 }
 0x104   : > { %785 = vrot.lane.b32.xlu2 %v1701_v28, %s1491_s21  ;;  %527 = vrot.lane.b32.xlu1 %v1620_v11, %s1488_s8 }
 0x105   : > { %721 = vrot.lane.b32.xlu0 %v1635_v14, %s1489_s18 }
 0x106   : > { %v670_v27 = vpop.permute.xlu2 %669  ;;  %v478_v47 = vpop.permute.xlu1 %477 }
 0x107   : > { %v476_v1 = vpop.permute.xlu0 %475  ;;  %v866_v2 = vsel %vm851_vm2, %v1937_v62, %v478_v47 }
 0x10c   : > { %719 = vrot.lane.b32.xlu2 %v1614_v9, %s1489_s18  ;;  %655 = vrot.lane.b32.xlu1 %v1754_v41, %s1490_s19  ;;  %v850_v9 = vsel %vm834_vm1, %v1862_v34, %v416_v49 }
 0x10d   : > { %591 = vrot.lane.b32.xlu0 %v1686_v25, %s1487_s7  ;;  %v867_v35 = vsel %vm851_vm2, %v850_v9, %v480_v12 }
 0x10e   : > { %v798_v36 = vpop.permute.xlu2 %797  ;;  %v544_v28 = vpop.permute.xlu1 %543 }
 0x10f   : > { %v514_v61 = vpop.permute.xlu0 %513 }
 0x110   : > { %v2008_v38 = vsel %vm868_vm3, %v1890_v50, %v514_v61  ;;  %v884_v50 = vsel %vm868_vm3, %v867_v35, %v544_v28 }
 0x111   : > { %v901_v20 = vsel %vm885_vm4, %v884_v50, %v608_v32 }
 0x114   : > { %589 = vrot.lane.b32.xlu2 %v1689_v26, %s1487_s7  ;;  %783 = vrot.lane.b32.xlu1 %v1704_v29, %s1491_s21 }
 0x115   : > { %525 = vrot.lane.b32.xlu0 %v1599_v6, %s1488_s8 }
 0x116   : > { %v732_v14 = vpop.permute.xlu2 %731  ;;  %v736_v41 = vpop.permute.xlu1 %735 }
 0x117   : > { %v672_v54 = vpop.permute.xlu0 %671 }
 0x118   : > { %v918_v63 = vsel %vm902_vm5, %v901_v20, %v672_v54  ;;  %v2306_v54 = vld [vmem:[#allocation4_spill] sm:$0xff] }
 0x119   : > { %v935_v48 = vsel %vm919_vm6, %v918_v63, %v736_v41 }
 0x11c   : > { %523 = vrot.lane.b32.xlu2 %v1602_v7, %s1488_s8  ;;  %717 = vrot.lane.b32.xlu1 %v1617_v10, %s1489_s18  ;;  %v883_v10 = vsel %vm868_vm3, %v866_v2, %v542_v13 }
 0x11d   : > { %653 = vrot.lane.b32.xlu0 %v1757_v42, %s1490_s19 }
 0x11e   : > { %v602_v29 = vpop.permute.xlu2 %601  ;;  %v606_v34 = vpop.permute.xlu1 %605 }
 0x11f   : > { %v800_v49 = vpop.permute.xlu0 %799  ;;  %v900_v42 = vsel %vm885_vm4, %v883_v10, %v606_v34 }
 0x120   : > { %v952_v17 = vsel %vm936_vm7, %v935_v48, %v800_v49  ;;  %v917_v12 = vsel %vm902_vm5, %v900_v42, %v670_v27 }
 0x121   : > { %1290 = vmatpush.xpose.msk.msra.mxu0 %vm957_vm8, %v952_v17  ;;  %1315 = vmatpush.xpose.msk.msra.mxu1 %vm957_vm8, %v952_v17 }
 0x122   : > { %1316 = vmatpush.xpose.msk.msra.mxu2 %vm957_vm8, %v952_v17  ;;  %1317 = vmatpush.xpose.msk.msra.mxu3 %vm957_vm8, %v952_v17 }
 0x124   : > { %651 = vrot.lane.b32.xlu2 %v1760_v43, %s1490_s19  ;;  %587 = vrot.lane.b32.xlu1 %v1668_v21, %s1487_s7 }
 0x125   : > { %781 = vrot.lane.b32.xlu0 %v1683_v24, %s1491_s21  ;;  %v865_v24 = vsel %vm851_vm2, %v1872_v18, %v476_v1 }
 0x126   : > { %v536_v62 = vpop.permute.xlu2 %535  ;;  %v540_v31 = vpop.permute.xlu1 %539 }
 0x127   : > { %v734_v40 = vpop.permute.xlu0 %733  ;;  %v882_v5 = vsel %vm868_vm3, %v865_v24, %v540_v31  ;;  %v2310_v31 = vld [vmem:[#allocation7_spill] sm:$0xff] }
 0x128   : > { %v934_v45 = vsel %vm919_vm6, %v917_v12, %v734_v40 }
 0x129   : > { %v951_v60 = vsel %vm936_vm7, %v934_v45, %v798_v36 }
 0x12a   : > { %1291 = vmatpush.xpose.msk.msra.mxu0 %vm957_vm8, %v951_v60  ;;  %1318 = vmatpush.xpose.msk.msra.mxu1 %vm957_vm8, %v951_v60 }
 0x12b   : > { %1319 = vmatpush.xpose.msk.msra.mxu2 %vm957_vm8, %v951_v60  ;;  %1320 = vmatpush.xpose.msk.msra.mxu3 %vm957_vm8, %v951_v60 }
 0x12c   : > { %779 = vrot.lane.b32.xlu2 %v1686_v25, %s1491_s21  ;;  %521 = vrot.lane.b32.xlu1 %v1605_v8, %s1488_s8 }
 0x12d   : > { %715 = vrot.lane.b32.xlu0 %v1620_v11, %s1489_s18 }
 0x12e   : > { %v664_v43 = vpop.permute.xlu2 %663  ;;  %v668_v32 = vpop.permute.xlu1 %667 }
 0x12f   : > { %v604_v59 = vpop.permute.xlu0 %603 }
 0x130   : > { %v899_v13 = vsel %vm885_vm4, %v882_v5, %v604_v59 }
 0x131   : > { %v916_v46 = vsel %vm902_vm5, %v899_v13, %v668_v32 }
 0x132   : > { %v933_v18 = vsel %vm919_vm6, %v916_v46, %v732_v14 }
 0x134   : > { %713 = vrot.lane.b32.xlu2 %v1599_v6, %s1489_s18  ;;  %649 = vrot.lane.b32.xlu1 %v1737_v37, %s1490_s19 }
 0x135   : > { %585 = vrot.lane.b32.xlu0 %v1671_v22, %s1487_s7 }
 0x136   : > { %v792_v11 = vpop.permute.xlu2 %791  ;;  %v796_v25 = vpop.permute.xlu1 %795 }
 0x137   : > { %v950_v16 = vsel %vm936_vm7, %v933_v18, %v796_v25  ;;  %v538_v27 = vpop.permute.xlu0 %537 }
 0x138   : > { %1292 = vmatpush.xpose.msk.msra.mxu0 %vm957_vm8, %v950_v16  ;;  %1321 = vmatpush.xpose.msk.msra.mxu1 %vm957_vm8, %v950_v16  ;;  %v881_v1 = vsel %vm868_vm3, %v1946_v55, %v538_v27 }
 0x139   : > { %1322 = vmatpush.xpose.msk.msra.mxu2 %vm957_vm8, %v950_v16  ;;  %1323 = vmatpush.xpose.msk.msra.mxu3 %vm957_vm8, %v950_v16  ;;  %v898_v36 = vsel %vm885_vm4, %v881_v1, %v602_v29 }
 0x13c   : > { %583 = vrot.lane.b32.xlu2 %v1674_v23, %s1487_s7  ;;  %777 = vrot.lane.b32.xlu1 %v1689_v26, %s1491_s21  ;;  %v2305_v26 = vld [vmem:[#allocation8_spill] sm:$0xff] }
 0x13d   : > { %519 = vrot.lane.b32.xlu0 %v1587_v3, %s1488_s8 }
 0x13e   : > { %v726_v6 = vpop.permute.xlu2 %725  ;;  %v730_v37 = vpop.permute.xlu1 %729 }
 0x13f   : > { %v666_v47 = vpop.permute.xlu0 %665 }
 0x140   : > { %v915_v28 = vsel %vm902_vm5, %v898_v36, %v666_v47 }
 0x141   : > { %v932_v41 = vsel %vm919_vm6, %v915_v28, %v730_v37 }
 0x144   : > { %517 = vrot.lane.b32.xlu2 %v1575_v0, %s1488_s8  ;;  %711 = vrot.lane.b32.xlu1 %v1602_v7, %s1489_s18  ;;  %v880_v7 = vsel %vm868_vm3, %v1988_v58, %v536_v62 }
 0x145   : > { %647 = vrot.lane.b32.xlu0 %v2305_v26, %s1490_s19 }
 0x146   : > { %v596_v61 = vpop.permute.xlu2 %595  ;;  %v600_v9 = vpop.permute.xlu1 %599 }
 0x147   : > { %v794_v14 = vpop.permute.xlu0 %793  ;;  %v897_v35 = vsel %vm885_vm4, %v880_v7, %v600_v9 }
 0x148   : > { %v949_v55 = vsel %vm936_vm7, %v932_v41, %v794_v14  ;;  %v914_v63 = vsel %vm902_vm5, %v897_v35, %v664_v43 }
 0x149   : > { %1293 = vmatpush.xpose.msk.msra.mxu0 %vm957_vm8, %v949_v55  ;;  %1324 = vmatpush.xpose.msk.msra.mxu1 %vm957_vm8, %v949_v55 }
 0x14a   : > { %1325 = vmatpush.xpose.msk.msra.mxu2 %vm957_vm8, %v949_v55  ;;  %1326 = vmatpush.xpose.msk.msra.mxu3 %vm957_vm8, %v949_v55 }
 0x14c   : > { %581 = vrot.lane.b32.xlu1 %v2306_v54, %s1487_s7  ;;  %645 = vrot.lane.b32.xlu2 %v1743_v39, %s1490_s19  ;;  %v2307_v39 = vld [vmem:[#allocation3_spill] sm:$0xff] }
 0x14d   : > { %775 = vrot.lane.b32.xlu0 %v1668_v21, %s1491_s21 }
 0x14e   : > { %v534_v50 = vpop.permute.xlu1 %533  ;;  %v530_v29 = vpop.permute.xlu2 %529 }
 0x14f   : > { %v728_v20 = vpop.permute.xlu0 %727  ;;  %v879_v49 = vsel %vm868_vm3, %v1992_v44, %v534_v50 }
 0x150   : > { %v931_v34 = vsel %vm919_vm6, %v914_v63, %v728_v20 }
 0x151   : > { %v948_v58 = vsel %vm936_vm7, %v931_v34, %v792_v11 }
 0x152   : > { %1294 = vmatpush.xpose.msk.msra.mxu0 %vm957_vm8, %v948_v58  ;;  %1327 = vmatpush.xpose.msk.msra.mxu1 %vm957_vm8, %v948_v58 }
 0x153   : > { %1328 = vmatpush.xpose.msk.msra.mxu2 %vm957_vm8, %v948_v58  ;;  %1329 = vmatpush.xpose.msk.msra.mxu3 %vm957_vm8, %v948_v58 }
 0x154   : > { %515 = vrot.lane.b32.xlu1 %v2307_v39, %s1488_s8  ;;  %773 = vrot.lane.b32.xlu2 %v1671_v22, %s1491_s21  ;;  %v2308_v22 = vld [vmem:[#allocation5_spill] sm:$0xff] }
 0x155   : > { %709 = vrot.lane.b32.xlu0 %v1605_v8, %s1489_s18 }
 0x156   : > { %v662_v21 = vpop.permute.xlu1 %661  ;;  %v658_v17 = vpop.permute.xlu2 %657 }
 0x157   : > { %v598_v48 = vpop.permute.xlu0 %597 }
 0x158   : > { %v896_v2 = vsel %vm885_vm4, %v879_v49, %v598_v48 }
 0x159   : > { %v913_v10 = vsel %vm902_vm5, %v896_v2, %v662_v21 }
 0x15a   : > { %v930_v42 = vsel %vm919_vm6, %v913_v10, %v726_v6 }
 0x15c   : > { %643 = vrot.lane.b32.xlu1 %v1725_v33, %s1490_s19  ;;  %707 = vrot.lane.b32.xlu2 %v1587_v3, %s1489_s18  ;;  %v2309_v3 = vld [vmem:[#allocation6_spill] sm:$0xff] }
 0x15d   : > { %579 = vrot.lane.b32.xlu0 %v2308_v22, %s1487_s7 }
 0x15e   : > { %v790_v8 = vpop.permute.xlu1 %789  ;;  %v786_v33 = vpop.permute.xlu2 %785 }
 0x15f   : > { %v947_v44 = vsel %vm936_vm7, %v930_v42, %v790_v8  ;;  %v532_v62 = vpop.permute.xlu0 %531 }
 0x160   : > { %1295 = vmatpush.xpose.msk.msra.mxu0 %vm957_vm8, %v947_v44  ;;  %1330 = vmatpush.xpose.msk.msra.mxu1 %vm957_vm8, %v947_v44  ;;  %v878_v45 = vsel %vm868_vm3, %v1934_v57, %v532_v62  ;;  %v877_v57 = vsel %vm868_vm3, %v1975_v56, %v530_v29 }
 0x161   : > { %1331 = vmatpush.xpose.msk.msra.mxu2 %vm957_vm8, %v947_v44  ;;  %1332 = vmatpush.xpose.msk.msra.mxu3 %vm957_vm8, %v947_v44  ;;  %v895_v60 = vsel %vm885_vm4, %v878_v45, %v596_v61 }
 0x164   : > { %577 = vrot.lane.b32.xlu1 %v2309_v3, %s1487_s7  ;;  %641 = vrot.lane.b32.xlu2 %v2310_v31, %s1490_s19  ;;  %s1059_s7 = sadd.s32 (%p1553_p5), %s1466_s11, %s1311_s6 }
 0x165   : > { %771 = vrot.lane.b32.xlu0 %v1674_v23, %s1491_s21  ;;  %s1312_s8 = sshll.u32 (%p1553_p5), %s1059_s7, 3 }
 0x166   : > { %v724_v40 = vpop.permute.xlu1 %723  ;;  %v720_v43 = vpop.permute.xlu2 %719  ;;  %s1061_s19 = scalar_lea.vmem (%p1553_p5), %s2290_s2, %s1312_s8 }
 0x167   : > { %v660_v12 = vpop.permute.xlu0 %659 }
 0x168   : > { %v912_v24 = vsel %vm902_vm5, %v895_v60, %v660_v12 }
 0x169   : > { %v929_v23 = vsel %vm919_vm6, %v912_v24, %v724_v40 }
 0x16c   : > { %769 = vrot.lane.b32.xlu1 %v2306_v54, %s1491_s21 }
 0x16d   : > { %705 = vrot.lane.b32.xlu0 %v1575_v0, %s1489_s18 }
 0x16e   : > { %v594_v32 = vpop.permute.xlu1 %593  ;;  %v590_v25 = vpop.permute.xlu2 %589 }
 0x16f   : > { %v788_v5 = vpop.permute.xlu0 %787  ;;  %v894_v0 = vsel %vm885_vm4, %v877_v57, %v594_v32 }
 0x170   : > { %v946_v59 = vsel %vm936_vm7, %v929_v23, %v788_v5  ;;  %v911_v11 = vsel %vm902_vm5, %v894_v0, %v658_v17 }
 0x171   : > { %1296 = vmatpush.xpose.msk.msra.mxu0 %vm957_vm8, %v946_v59  ;;  %1333 = vmatpush.xpose.msk.msra.mxu1 %vm957_vm8, %v946_v59 }
 0x172   : > { %1334 = vmatpush.xpose.msk.msra.mxu2 %vm957_vm8, %v946_v59  ;;  %1335 = vmatpush.xpose.msk.msra.mxu3 %vm957_vm8, %v946_v59 }
 0x176   : > { %v528_v13 = vpop.permute.xlu1 %527  ;;  %v524_v47 = vpop.permute.xlu2 %523 }
 0x177   : > { %v722_v46 = vpop.permute.xlu0 %721  ;;  %v876_v27 = vsel %vm868_vm3, %v1979_v53, %v528_v13 }
 0x178   : > { %v928_v18 = vsel %vm919_vm6, %v911_v11, %v722_v46 }
 0x179   : > { %v945_v16 = vsel %vm936_vm7, %v928_v18, %v786_v33 }
 0x17a   : > { %1297 = vmatpush.xpose.msk.msra.mxu0 %vm957_vm8, %v945_v16  ;;  %1336 = vmatpush.xpose.msk.msra.mxu1 %vm957_vm8, %v945_v16 }
 0x17b   : > { %1337 = vmatpush.xpose.msk.msra.mxu2 %vm957_vm8, %v945_v16  ;;  %1338 = vmatpush.xpose.msk.msra.mxu3 %vm957_vm8, %v945_v16 }
 0x17e   : > { %v656_v56 = vpop.permute.xlu1 %655  ;;  %v652_v53 = vpop.permute.xlu2 %651 }
 0x17f   : > { %v592_v6 = vpop.permute.xlu0 %591 }
 0x180   : > { %v893_v37 = vsel %vm885_vm4, %v876_v27, %v592_v6 }
 0x181   : > { %v910_v1 = vsel %vm902_vm5, %v893_v37, %v656_v56 }
 0x182   : > { %v927_v28 = vsel %vm919_vm6, %v910_v1, %v720_v43 }
 0x186   : > { %v784_v36 = vpop.permute.xlu1 %783  ;;  %v780_v35 = vpop.permute.xlu2 %779 }
 0x187   : > { %v944_v26 = vsel %vm936_vm7, %v927_v28, %v784_v36  ;;  %v526_v61 = vpop.permute.xlu0 %525 }
 0x188   : > { %1298 = vmatpush.xpose.msk.msra.mxu0 %vm957_vm8, %v944_v26  ;;  %1339 = vmatpush.xpose.msk.msra.mxu1 %vm957_vm8, %v944_v26  ;;  %v875_v41 = vsel %vm868_vm3, %v1920_v52, %v526_v61  ;;  %v874_v52 = vsel %vm868_vm3, %v1962_v30, %v524_v47 }
 0x189   : > { %1340 = vmatpush.xpose.msk.msra.mxu2 %vm957_vm8, %v944_v26  ;;  %1341 = vmatpush.xpose.msk.msra.mxu3 %vm957_vm8, %v944_v26  ;;  %v892_v55 = vsel %vm885_vm4, %v875_v41, %v590_v25  ;;  %v955_v41 = vld [vmem:[%s2289_s1 + $0x10] sm:$0xff] }
 0x18e   : > { %v718_v9 = vpop.permute.xlu1 %717  ;;  %v714_v21 = vpop.permute.xlu2 %713 }
 0x18f   : > { %v654_v14 = vpop.permute.xlu0 %653 }
 0x190   : > { %v909_v7 = vsel %vm902_vm5, %v892_v55, %v654_v14  ;;  %v953_v14 = vld [vmem:[%s2289_s1] sm:$0xff]  ;;  %v956_v55 = vld [vmem:[%s2289_s1 + $0x18] sm:$0xff] }
 0x191   : > { %v926_v20 = vsel %vm919_vm6, %v909_v7, %v718_v9 }
 0x196   : > { %v588_v54 = vpop.permute.xlu1 %587  ;;  %v584_v22 = vpop.permute.xlu2 %583 }
 0x197   : > { %v782_v50 = vpop.permute.xlu0 %781  ;;  %v891_v29 = vsel %vm885_vm4, %v874_v52, %v588_v54 }
 0x198   : > { %v943_v63 = vsel %vm936_vm7, %v926_v20, %v782_v50  ;;  %v908_v39 = vsel %vm902_vm5, %v891_v29, %v652_v53 }
 0x199   : > { %1299 = vmatpush.xpose.msk.msra.mxu0 %vm957_vm8, %v943_v63  ;;  %1342 = vmatpush.xpose.msk.msra.mxu1 %vm957_vm8, %v943_v63 }
 0x19a   : > { %1343 = vmatpush.xpose.msk.msra.mxu2 %vm957_vm8, %v943_v63  ;;  %1344 = vmatpush.xpose.msk.msra.mxu3 %vm957_vm8, %v943_v63 }
 0x19e   : > { %v522_v34 = vpop.permute.xlu1 %521 }
 0x19f   : > { %v716_v58 = vpop.permute.xlu0 %715  ;;  %v873_v2 = vsel %vm868_vm3, %v1966_v51, %v522_v34  ;;  %v518_v51 = vpop.permute.xlu2 %517 }
 0x1a0   : > { %v925_v49 = vsel %vm919_vm6, %v908_v39, %v716_v58 }
 0x1a1   : > { %v942_v48 = vsel %vm936_vm7, %v925_v49, %v780_v35 }
 0x1a2   : > { %1300 = vmatpush.xpose.msk.msra.mxu0 %vm957_vm8, %v942_v48  ;;  %1345 = vmatpush.xpose.msk.msra.mxu1 %vm957_vm8, %v942_v48 }
 0x1a3   : > { %1346 = vmatpush.xpose.msk.msra.mxu2 %vm957_vm8, %v942_v48  ;;  %1347 = vmatpush.xpose.msk.msra.mxu3 %vm957_vm8, %v942_v48 }
 0x1a6   : > { %v650_v30 = vpop.permute.xlu1 %649 }
 0x1a7   : > { %v586_v17 = vpop.permute.xlu0 %585  ;;  %v646_v60 = vpop.permute.xlu2 %645 }
 0x1a8   : > { %v890_v10 = vsel %vm885_vm4, %v873_v2, %v586_v17 }
 0x1a9   : > { %v907_v8 = vsel %vm902_vm5, %v890_v10, %v650_v30 }
 0x1aa   : > { %v924_v44 = vsel %vm919_vm6, %v907_v8, %v714_v21 }
 0x1ae   : > { %v778_v42 = vpop.permute.xlu1 %777 }
 0x1af   : > { %v941_v62 = vsel %vm936_vm7, %v924_v44, %v778_v42  ;;  %v520_v33 = vpop.permute.xlu0 %519  ;;  %v774_v57 = vpop.permute.xlu2 %773 }
 0x1b0   : > { %1301 = vmatpush.xpose.msk.msra.mxu0 %vm957_vm8, %v941_v62  ;;  %1348 = vmatpush.xpose.msk.msra.mxu1 %vm957_vm8, %v941_v62  ;;  %v872_v40 = vsel %vm868_vm3, %v1905_v19, %v520_v33  ;;  %v871_v19 = vsel %vm868_vm3, %v1949_v15, %v518_v51 }
 0x1b1   : > { %1349 = vmatpush.xpose.msk.msra.mxu2 %vm957_vm8, %v941_v62  ;;  %1350 = vmatpush.xpose.msk.msra.mxu3 %vm957_vm8, %v941_v62  ;;  %v889_v12 = vsel %vm885_vm4, %v872_v40, %v584_v22 }
 0x1b6   : > { %v712_v3 = vpop.permute.xlu1 %711 }
 0x1b7   : > { %v648_v31 = vpop.permute.xlu0 %647  ;;  %v708_v56 = vpop.permute.xlu2 %707 }
 0x1b8   : > { %v906_v45 = vsel %vm902_vm5, %v889_v12, %v648_v31 }
 0x1b9   : > { %v923_v32 = vsel %vm919_vm6, %v906_v45, %v712_v3 }
 0x1be   : > { %v582_v24 = vpop.permute.xlu1 %581 }
 0x1bf   : > { %v776_v43 = vpop.permute.xlu0 %775  ;;  %v888_v23 = vsel %vm885_vm4, %v871_v19, %v582_v24  ;;  %v642_v36 = vpop.permute.xlu2 %641 }
 0x1c0   : > { %v940_v5 = vsel %vm936_vm7, %v923_v32, %v776_v43  ;;  %v905_v0 = vsel %vm902_vm5, %v888_v23, %v646_v60 }
 0x1c1   : > { %1302 = vmatpush.xpose.msk.msra.mxu0 %vm957_vm8, %v940_v5  ;;  %1351 = vmatpush.xpose.msk.msra.mxu1 %vm957_vm8, %v940_v5 }
 0x1c2   : > { %1352 = vmatpush.xpose.msk.msra.mxu2 %vm957_vm8, %v940_v5  ;;  %1353 = vmatpush.xpose.msk.msra.mxu3 %vm957_vm8, %v940_v5 }
 0x1c6   : > { %v516_v59 = vpop.permute.xlu1 %515 }
 0x1c7   : > { %v710_v13 = vpop.permute.xlu0 %709  ;;  %v870_v18 = vsel %vm868_vm3, %v1953_v4, %v516_v59 }
 0x1c8   : > { %v922_v46 = vsel %vm919_vm6, %v905_v0, %v710_v13 }
 0x1c9   : > { %v939_v11 = vsel %vm936_vm7, %v922_v46, %v774_v57 }
 0x1ca   : > { %1303 = vmatpush.xpose.msk.msra.mxu0 %vm957_vm8, %v939_v11  ;;  %1354 = vmatpush.xpose.msk.msra.mxu1 %vm957_vm8, %v939_v11 }
 0x1cb   : > { %1355 = vmatpush.xpose.msk.msra.mxu2 %vm957_vm8, %v939_v11  ;;  %1356 = vmatpush.xpose.msk.msra.mxu3 %vm957_vm8, %v939_v11 }
 0x1ce   : > { %v644_v15 = vpop.permute.xlu1 %643 }
 0x1cf   : > { %v580_v25 = vpop.permute.xlu0 %579 }
 0x1d0   : > { %v887_v16 = vsel %vm885_vm4, %v870_v18, %v580_v25 }
 0x1d1   : > { %v904_v27 = vsel %vm902_vm5, %v887_v16, %v644_v15 }
 0x1d2   : > { %v921_v37 = vsel %vm919_vm6, %v904_v27, %v708_v56 }
 0x1d6   : > { %v578_v6 = vpop.permute.xlu1 %577 }
 0x1d7   : > { %v772_v47 = vpop.permute.xlu0 %771  ;;  %v886_v4 = vsel %vm885_vm4, %v2008_v38, %v578_v6  ;;  %v954_v38 = vld [vmem:[%s2289_s1 + $0x8] sm:$0xff] }
 0x1d8   : > { %v938_v1 = vsel %vm936_vm7, %v921_v37, %v772_v47  ;;  %v903_v26 = vsel %vm902_vm5, %v886_v4, %v642_v36 }
 0x1d9   : > { %1304 = vmatpush.xpose.msk.msra.mxu0 %vm957_vm8, %v938_v1  ;;  %1357 = vmatpush.xpose.msk.msra.mxu1 %vm957_vm8, %v938_v1 }
 0x1da   : > { %1358 = vmatpush.xpose.msk.msra.mxu2 %vm957_vm8, %v938_v1  ;;  %1359 = vmatpush.xpose.msk.msra.mxu3 %vm957_vm8, %v938_v1 }
 0x1de   : > { %v770_v28 = vpop.permute.xlu1 %769 }
 0x1df   : > { %v706_v61 = vpop.permute.xlu0 %705 }
 0x1e0   : > { %v920_v53 = vsel %vm919_vm6, %v903_v26, %v706_v61 }
 0x1e1   : > { %v937_v9 = vsel %vm936_vm7, %v920_v53, %v770_v28 }
 0x1e2   : > { %1305 = vmatpush.xpose.msk.msra.mxu0 %vm957_vm8, %v937_v9  ;;  %1360 = vmatpush.xpose.msk.msra.mxu1 %vm957_vm8, %v937_v9 }
 0x1e3   : > { %1361 = vmatpush.xpose.msk.msra.mxu2 %vm957_vm8, %v937_v9  ;;  %1362 = vmatpush.xpose.msk.msra.mxu3 %vm957_vm8, %v937_v9 }
 0x1e5   : > { %1306 = vmatmul.msk.f32.vlgmr.msra.gmra.mxu0 %vm957_vm8, %v953_v14  ;;  %1307 = vmatmul.msk.f32.vlgmr.msra.gmra.mxu1 %vm957_vm8, %v954_v38 }
 0x1e6   : > { %1308 = vmatmul.msk.f32.vlgmr.msra.gmra.mxu2 %vm957_vm8, %v955_v41  ;;  %1309 = vmatmul.msk.f32.vlgmr.msra.gmra.mxu3 %vm957_vm8, %v956_v55 }
 0x262   : > { %v1035_v7 = vpop.f32.mrf.mxu0  ;;  %v1038_v35 = vpop.f32.mrf.mxu1 }
 0x263   : > { %1047 = vst [vmem:[%s146_s5] sm:$0xff] %v1035_v7 }
 0x264   : > { %1048 = vst [vmem:[%s146_s5 + $0x8] sm:$0xff] %v1038_v35 }
 0x267   : > { %1057 = sbr.rel (!%p1553_p5) target bundleno = 628 (0x274), region = 32 }
 0x269   : > { %v1041_v54 = vpop.f32.mrf.mxu2  ;;  %v1044_v50 = vpop.f32.mrf.mxu3 }
 0x26a   : > { %1049 = vst [vmem:[%s146_s5 + $0x10] sm:$0xff] %v1041_v54  ;;  %v1096_v20 = vld [vmem:[%s146_s5] sm:$0xff] (%p1553_p5) }
 0x26b   : > { %1050 = vst [vmem:[%s146_s5 + $0x18] sm:$0xff] %v1044_v50  ;;  %v1098_v63 = vld [vmem:[%s146_s5 + $0x8] sm:$0xff] (%p1553_p5) }
 0x26c   : > { %1097 = vst [vmem:[%s1061_s19] sm:$0xff] %v1096_v20 }
 0x26d   : > { %1099 = vst [vmem:[%s1061_s19 + $0x10] sm:$0xff] %v1098_v63 }
 0x271   : > { %v1100_v52 = vld [vmem:[%s146_s5 + $0x10] sm:$0xff] }
 0x272   : > { %v1102_v29 = vld [vmem:[%s146_s5 + $0x18] sm:$0xff]  ;;  %1101 = vst [vmem:[%s1061_s19 + $0x20] sm:$0xff] %v1100_v52 }
 0x273   : > { %1103 = vst [vmem:[%s1061_s19 + $0x30] sm:$0xff] %v1102_v29 }
 0x274 PF: > { %s12_s15 = sadd.s32 1, %s1482_s15   ;;  %s2311_s9 = smov %s1462_s10 }
 0x275   : > { %p9_p10 = scmp.ge.s32.totalorder %s12_s15, 6   ;;  %s2312_s10 = smov %s1564_s24 }
 0x276   : > { %s2313_s11 = smov %s1474_s13  ;;  %s2314_s12 = smov %s1478_s14 }
 0x277   : > { %s2315_s13 = smov %s2318_s16  ;;  %s2316_s14 = smov %s2322_s17 }
 0x278   :  { %11 = sbr.rel (!%p9_p10) target bundleno = 4 (0x4), region = 99 }

</bundles_post_ra>
